<compile_context>
chip_gen: v6e
topology: v6e:2x2x1
jax: 0.10.0
libtpu: 0.0.40
codegen_flags: <defaults>
</compile_context>

<pallas_src>
import math
import jax
import jax.numpy as jnp
from jax.experimental import pallas as pl
from jax.experimental.pallas import tpu as pltpu  # noqa: F401  (TPU backend)

B, S, H = 2, 8, 32            # batch, seq, synthetic BERT hidden (stands in for 768)
VOCAB, MAXPOS = 128, 64
FFN = 64
NUM_F = 8                     # numeric_input_size
NUM_LABELS = 3                # num_labels
LOGIT_PAD = 128               # lane-dense padded logits width (trimmed in wrapper)
BS = B * S

assert S & (S - 1) == 0, "S must be a power of two (batch id derived via shift)"
SEQ_SHIFT = S.bit_length() - 1        # log2(S)

# ---- bf16 weight slab row offsets (all multiples of 16 = bf16 sublane tile) ----
R_TOK = 0          # rows   0:128  tok_emb (VOCAB, H)   in cols 0:32
R_QKVO = 128       # rows 128:160  Wq|Wk|Wv|Wo (H, 4H)  full 128 lanes
R_W1 = 160         # rows 160:192  w1 (H, FFN)          in cols 0:64
R_W2 = 192         # rows 192:256  w2 (FFN, H)          in cols 0:32
R_WN2 = 256        # rows 256:320  wn2 (64, 32)         in cols 0:32
R_WC = 320         # rows 320:384  wc  (H+32, 128-pad)
WSLAB_ROWS = 384

# ---- f32 vector-param slab rows ----
V_POS = 0                              # rows 0:16  pos_emb tiled over batch (cols 0:32)
V_LNE_G, V_LNE_B = 16, 17              # embedding LayerNorm
V_LN1_G, V_LN1_B = 18, 19              # post-attention LayerNorm
V_LN2_G, V_LN2_B = 20, 21              # post-FFN LayerNorm
V_BQKVO, V_B1, V_B2, V_BN1, V_BN2, V_BC = 22, 23, 24, 25, 26, 27
V_WN1 = 32                             # rows 32:40  wn1 (NUM_F, 64) kept f32 (tiny)
VSLAB_ROWS = 40


def _layer_norm(x, g, b, eps=1e-12):
    mu = jnp.mean(x, axis=-1, keepdims=True)
    var = jnp.mean((x - mu) ** 2, axis=-1, keepdims=True)
    return (x - mu) * jax.lax.rsqrt(var + eps) * g + b


# ---------------- fused Pallas kernel ----------------

def fused_kernel(ids_ref, mask_ref, num_ref, w_ref, v_ref, out_ref):
    f32, bf16 = jnp.float32, jnp.bfloat16

    vp = v_ref[...]                                        # (40,128) f32 param slab
    pos = vp[V_POS:V_POS + BS, 0:H]                        # (B*S, H) tiled pos emb
    lne_g = vp[V_LNE_G:V_LNE_G + 1, 0:H]; lne_b = vp[V_LNE_B:V_LNE_B + 1, 0:H]
    ln1_g = vp[V_LN1_G:V_LN1_G + 1, 0:H]; ln1_b = vp[V_LN1_B:V_LN1_B + 1, 0:H]
    ln2_g = vp[V_LN2_G:V_LN2_G + 1, 0:H]; ln2_b = vp[V_LN2_B:V_LN2_B + 1, 0:H]
    bqkvo = vp[V_BQKVO:V_BQKVO + 1, :]
    b1 = vp[V_B1:V_B1 + 1, 0:FFN]
    b2 = vp[V_B2:V_B2 + 1, 0:H]
    bn1 = vp[V_BN1:V_BN1 + 1, 0:64]
    bn2 = vp[V_BN2:V_BN2 + 1, 0:32]
    bc = vp[V_BC:V_BC + 1, :]
    wn1 = vp[V_WN1:V_WN1 + NUM_F, 0:64]                    # tiny, stays f32

    # ---- token + position embedding: gather realised as one-hot MXU matmul ----
    ids = ids_ref[...]                                     # (B*S, 1) int32
    vocab_iota = jax.lax.broadcasted_iota(jnp.int32, (BS, VOCAB), 1)
    onehot = jnp.where(vocab_iota == ids, 1.0, 0.0).astype(bf16)
    emb = jnp.dot(onehot, w_ref[R_TOK:R_TOK + VOCAB, :],
                  preferred_element_type=f32)[:, 0:H] + pos            # (B*S, H)

    h = _layer_norm(emb, lne_g, lne_b)                     # embedding LayerNorm

    # ---- single-head masked self-attention over flattened (B*S) rows ----
    # (cols 96:128 of this matmul are h@Wo -- dead work, negligible at this size)
    wqkvo = w_ref[R_QKVO:R_QKVO + H, :]                    # (32,128) bf16 = Wq|Wk|Wv|Wo
    qkv = jnp.dot(h.astype(bf16), wqkvo, preferred_element_type=f32) + bqkvo
    q, k, v = qkv[:, 0:H], qkv[:, H:2 * H], qkv[:, 2 * H:3 * H]

    # block-diagonal (same-batch) + key-padding additive bias, built in-kernel
    rowb = jnp.right_shift(jax.lax.broadcasted_iota(jnp.int32, (BS, BS), 0), SEQ_SHIFT)
    colb = jnp.right_shift(jax.lax.broadcasted_iota(jnp.int32, (BS, BS), 1), SEQ_SHIFT)
    keep = (rowb == colb) & (mask_ref[...] > 0.5)          # mask broadcasts over rows
    bias = jnp.where(keep, 0.0, -1e9)

    scores = jax.lax.dot_general(q.astype(bf16), k.astype(bf16),
                                 (((1,), (1,)), ((), ())),
                                 preferred_element_type=f32)
    scores = scores * (1.0 / math.sqrt(H)) + bias
    m = jnp.max(scores, axis=-1, keepdims=True)
    e = jnp.exp(scores - m)
    p = e * pl.reciprocal(jnp.sum(e, axis=-1, keepdims=True), approx=True)
    ctx = jnp.dot(p.astype(bf16), v.astype(bf16), preferred_element_type=f32)
    attn = (jnp.dot(ctx.astype(bf16), wqkvo[:, 3 * H:4 * H],
                    preferred_element_type=f32) + bqkvo[:, 3 * H:4 * H])

    h1 = _layer_norm(h + attn, ln1_g, ln1_b)
    # TODO(synk): real BERT uses exact erf-GELU; tanh-approx kept since this
    # encoder is a synthetic stand-in for the pretrained BertModel anyway.
    inner = jax.nn.gelu(jnp.dot(h1.astype(bf16), w_ref[R_W1:R_W1 + H, :],
                                preferred_element_type=f32)[:, 0:FFN] + b1)
    ff = jnp.dot(inner.astype(bf16), w_ref[R_W2:R_W2 + FFN, :],
                 preferred_element_type=f32)[:, 0:H] + b2
    hidden = _layer_norm(h1 + ff, ln2_g, ln2_b)            # (B*S, H) last_hidden_state

    # ---- PULLUP head ----
    # per-batch mean over seq (== torch.mean(dim=1), pads included) via a
    # pooling-matrix matmul; the pooling matrix is built in-kernel from iota.
    bi = jax.lax.broadcasted_iota(jnp.int32, (B, BS), 0)
    cj = jnp.right_shift(jax.lax.broadcasted_iota(jnp.int32, (B, BS), 1), SEQ_SHIFT)
    pool = jnp.where(bi == cj, 1.0 / S, 0.0)               # (B, B*S)
    pooled = jnp.dot(pool, hidden, preferred_element_type=f32)          # (B, H)
    # nn.Dropout(0.1) is identity at inference; no RNG applied here.

    xnum = num_ref[...]                                    # (B, NUM_F) f32
    a1 = jnp.maximum(jnp.dot(xnum, wn1, preferred_element_type=f32) + bn1, 0.0)
    a2 = jnp.maximum(jnp.dot(a1.astype(bf16), w_ref[R_WN2:R_WN2 + 64, :],
                             preferred_element_type=f32)[:, 0:32] + bn2, 0.0)

    # cat([pooled, a2], dim=1) @ Wc == pooled @ Wc[:H] + a2 @ Wc[H:]
    wc = w_ref[R_WC:R_WC + 64, :]                          # (64,128) bf16
    logits = (jnp.dot(pooled.astype(bf16), wc[0:H, :], preferred_element_type=f32)
              + jnp.dot(a2.astype(bf16), wc[H:H + 32, :], preferred_element_type=f32)
              + bc)
    out_ref[...] = logits                                  # (B, 128) lane-dense store


# ---------------- wrapper ----------------

def pullup_forward(params, input_ids, attention_mask, numeric_features):
    ids_col = input_ids.reshape(BS, 1).astype(jnp.int32)
    mask_row = attention_mask.reshape(1, BS).astype(jnp.float32)
    num = numeric_features.astype(jnp.float32)

    logits_pad = pl.pallas_call(
        fused_kernel,
        out_shape=jax.ShapeDtypeStruct((B, LOGIT_PAD), jnp.float32),
        cost_estimate=pl.CostEstimate(flops=1_200_000, transcendentals=1_400,
                                      bytes_accessed=122_000),
    )(ids_col, mask_row, num, params["wslab"], params["vslab"])
    return logits_pad[:, :NUM_LABELS]                      # trim lane padding


# ---------------- deterministic parameter init + slab packing ----------------

def init_params(key):
    keys = iter(jax.random.split(key, 16))

    def dense(shape, scale=0.02):
        return jax.random.normal(next(keys), shape, jnp.float32) * scale

    tok_emb = dense((VOCAB, H))
    pos_emb = dense((MAXPOS, H))
    wq, wk, wv, wo = (dense((H, H)) for _ in range(4))
    w1 = dense((H, FFN))
    w2 = dense((FFN, H))
    wn1 = dense((NUM_F, 64))                  # numeric_layers[0]
    wn2 = dense((64, 32))                     # numeric_layers[2]
    wc = dense((H + 32, NUM_LABELS))          # combined_layer

    # ---- bf16 weight slab (all row offsets 16-aligned, all lane-dense 128) ----
    ws = jnp.zeros((WSLAB_ROWS, 128), jnp.float32)
    ws = ws.at[R_TOK:R_TOK + VOCAB, 0:H].set(tok_emb)
    ws = ws.at[R_QKVO:R_QKVO + H, :].set(jnp.concatenate([wq, wk, wv, wo], axis=1))
    ws = ws.at[R_W1:R_W1 + H, 0:FFN].set(w1)
    ws = ws.at[R_W2:R_W2 + FFN, 0:H].set(w2)
    ws = ws.at[R_WN2:R_WN2 + 64, 0:32].set(wn2)
    ws = ws.at[R_WC:R_WC + H, 0:NUM_LABELS].set(wc[:H])
    ws = ws.at[R_WC + H:R_WC + H + 32, 0:NUM_LABELS].set(wc[H:])
    wslab = ws.astype(jnp.bfloat16)

    # ---- f32 vector-param slab (LN params, biases, tiled pos emb, tiny wn1) ----
    vs = jnp.zeros((VSLAB_ROWS, 128), jnp.float32)
    vs = vs.at[V_POS:V_POS + BS, 0:H].set(jnp.tile(pos_emb[:S], (B, 1)))
    for r in (V_LNE_G, V_LN1_G, V_LN2_G):                  # LayerNorm gammas = 1
        vs = vs.at[r, 0:H].set(1.0)
    # all linear / attention / LN-beta biases are zero-init -> rows already zero
    vs = vs.at[V_WN1:V_WN1 + NUM_F, 0:64].set(wn1)

    return dict(wslab=wslab, vslab=vs)


if __name__ == "__main__":
    root = jax.random.PRNGKey(0)
    kp, kd = jax.random.split(root)
    params = init_params(kp)

    k1, k2 = jax.random.split(kd)
    input_ids = jax.random.randint(k1, (B, S), 0, VOCAB)
    attention_mask = jnp.concatenate(
        [jnp.ones((B, S - 2), jnp.float32), jnp.zeros((B, 2), jnp.float32)], axis=1)
    numeric_features = jax.random.normal(k2, (B, NUM_F), jnp.float32)

    forward = jax.jit(pullup_forward)
    logits = forward(params, input_ids, attention_mask, numeric_features)
    logits = jax.block_until_ready(logits)
    assert logits.shape == (B, NUM_LABELS)
    assert bool(jnp.all(jnp.isfinite(logits)))
    print("KERNEL_OK")
</pallas_src>

<mosaic_0001>
module attributes {stable_mosaic.version = 11 : i64} {
  func.func @fused_kernel(%arg0: memref<16x1xi32, #tpu.memory_space<vmem>>, %arg1: memref<1x16xf32, #tpu.memory_space<vmem>>, %arg2: memref<2x8xf32, #tpu.memory_space<vmem>>, %arg3: memref<384x128xbf16, #tpu.memory_space<vmem>>, %arg4: memref<40x128xf32, #tpu.memory_space<vmem>>, %arg5: memref<2x128xf32, #tpu.memory_space<vmem>>) attributes {dimension_semantics = [], scalar_prefetch = 0 : i64, scratch_operands = 0 : i64, tpu.core_type = #tpu.core_type<tc>} {
    %c0 = arith.constant 0 : index
    %c0_0 = arith.constant 0 : index
    %0 = vector.load %arg4[%c0, %c0_0] : memref<40x128xf32, #tpu.memory_space<vmem>>, vector<40x128xf32>
    %1 = vector.extract_strided_slice %0 {offsets = [0, 0], sizes = [16, 32], strides = [1, 1]} : vector<40x128xf32> to vector<16x32xf32>
    %2 = vector.extract_strided_slice %0 {offsets = [16, 0], sizes = [1, 32], strides = [1, 1]} : vector<40x128xf32> to vector<1x32xf32>
    %3 = vector.extract_strided_slice %0 {offsets = [17, 0], sizes = [1, 32], strides = [1, 1]} : vector<40x128xf32> to vector<1x32xf32>
    %4 = vector.extract_strided_slice %0 {offsets = [18, 0], sizes = [1, 32], strides = [1, 1]} : vector<40x128xf32> to vector<1x32xf32>
    %5 = vector.extract_strided_slice %0 {offsets = [19, 0], sizes = [1, 32], strides = [1, 1]} : vector<40x128xf32> to vector<1x32xf32>
    %6 = vector.extract_strided_slice %0 {offsets = [20, 0], sizes = [1, 32], strides = [1, 1]} : vector<40x128xf32> to vector<1x32xf32>
    %7 = vector.extract_strided_slice %0 {offsets = [21, 0], sizes = [1, 32], strides = [1, 1]} : vector<40x128xf32> to vector<1x32xf32>
    %8 = vector.extract_strided_slice %0 {offsets = [22, 0], sizes = [1, 128], strides = [1, 1]} : vector<40x128xf32> to vector<1x128xf32>
    %9 = vector.extract_strided_slice %0 {offsets = [23, 0], sizes = [1, 64], strides = [1, 1]} : vector<40x128xf32> to vector<1x64xf32>
    %10 = vector.extract_strided_slice %0 {offsets = [24, 0], sizes = [1, 32], strides = [1, 1]} : vector<40x128xf32> to vector<1x32xf32>
    %11 = vector.extract_strided_slice %0 {offsets = [25, 0], sizes = [1, 64], strides = [1, 1]} : vector<40x128xf32> to vector<1x64xf32>
    %12 = vector.extract_strided_slice %0 {offsets = [26, 0], sizes = [1, 32], strides = [1, 1]} : vector<40x128xf32> to vector<1x32xf32>
    %13 = vector.extract_strided_slice %0 {offsets = [27, 0], sizes = [1, 128], strides = [1, 1]} : vector<40x128xf32> to vector<1x128xf32>
    %14 = vector.extract_strided_slice %0 {offsets = [32, 0], sizes = [8, 64], strides = [1, 1]} : vector<40x128xf32> to vector<8x64xf32>
    %c0_1 = arith.constant 0 : index
    %c0_2 = arith.constant 0 : index
    %15 = vector.load %arg0[%c0_1, %c0_2] : memref<16x1xi32, #tpu.memory_space<vmem>>, vector<16x1xi32>
    %16 = tpu.iota {dimensions = array<i32: 1>} : vector<16x128xi32>
    %17 = vector.broadcast %15 : vector<16x1xi32> to vector<16x128xi32>
    %18 = arith.cmpi eq, %16, %17 : vector<16x128xi32>
    %cst = arith.constant 1.000000e+00 : f32
    %cst_3 = arith.constant 0.000000e+00 : f32
    %19 = vector.broadcast %cst : f32 to vector<16x128xf32>
    %20 = vector.broadcast %cst_3 : f32 to vector<16x128xf32>
    %21 = arith.select %18, %19, %20 : vector<16x128xi1>, vector<16x128xf32>
    %22 = arith.truncf %21 : vector<16x128xf32> to vector<16x128xbf16>
    %c0_4 = arith.constant 0 : index
    %c0_5 = arith.constant 0 : index
    %23 = vector.load %arg3[%c0_4, %c0_5] : memref<384x128xbf16, #tpu.memory_space<vmem>>, vector<128x128xbf16>
    %cst_6 = arith.constant dense<0.000000e+00> : vector<16x128xf32>
    %24 = tpu.matmul %22, %23, %cst_6 {dimension_numbers = #tpu.dot_dimension_numbers<[1], [0], [0], [1], [0, 0, 1, 1], [], []>} : vector<16x128xbf16>, vector<128x128xbf16>, vector<16x128xf32> -> vector<16x128xf32>
    %25 = vector.extract_strided_slice %24 {offsets = [0, 0], sizes = [16, 32], strides = [1, 1]} : vector<16x128xf32> to vector<16x32xf32>
    %26 = arith.addf %25, %1 : vector<16x32xf32>
    %cst_7 = arith.constant dense<0.000000e+00> : vector<16xf32>
    %27 = vector.multi_reduction <add>, %26, %cst_7 [1] : vector<16x32xf32> to vector<16xf32>
    %28 = vector.shape_cast %27 : vector<16xf32> to vector<16x1xf32>
    %cst_8 = arith.constant 3.200000e+01 : f32
    %29 = vector.broadcast %cst_8 : f32 to vector<16x1xf32>
    %30 = arith.divf %28, %29 : vector<16x1xf32>
    %31 = vector.broadcast %30 : vector<16x1xf32> to vector<16x32xf32>
    %32 = arith.subf %26, %31 : vector<16x32xf32>
    %33 = arith.mulf %32, %32 : vector<16x32xf32>
    %cst_9 = arith.constant dense<0.000000e+00> : vector<16xf32>
    %34 = vector.multi_reduction <add>, %33, %cst_9 [1] : vector<16x32xf32> to vector<16xf32>
    %35 = vector.shape_cast %34 : vector<16xf32> to vector<16x1xf32>
    %cst_10 = arith.constant 3.200000e+01 : f32
    %36 = vector.broadcast %cst_10 : f32 to vector<16x1xf32>
    %37 = arith.divf %35, %36 : vector<16x1xf32>
    %38 = vector.broadcast %30 : vector<16x1xf32> to vector<16x32xf32>
    %39 = arith.subf %26, %38 : vector<16x32xf32>
    %cst_11 = arith.constant 9.99999996E-13 : f32
    %40 = vector.broadcast %cst_11 : f32 to vector<16x1xf32>
    %41 = arith.addf %37, %40 : vector<16x1xf32>
    %42 = math.rsqrt %41 : vector<16x1xf32>
    %43 = vector.broadcast %42 : vector<16x1xf32> to vector<16x32xf32>
    %44 = arith.mulf %39, %43 : vector<16x32xf32>
    %45 = vector.broadcast %2 : vector<1x32xf32> to vector<16x32xf32>
    %46 = arith.mulf %44, %45 : vector<16x32xf32>
    %47 = vector.broadcast %3 : vector<1x32xf32> to vector<16x32xf32>
    %48 = arith.addf %46, %47 : vector<16x32xf32>
    %c128 = arith.constant 128 : index
    %c0_12 = arith.constant 0 : index
    %49 = vector.load %arg3[%c128, %c0_12] : memref<384x128xbf16, #tpu.memory_space<vmem>>, vector<32x128xbf16>
    %50 = arith.truncf %48 : vector<16x32xf32> to vector<16x32xbf16>
    %cst_13 = arith.constant dense<0.000000e+00> : vector<16x128xf32>
    %51 = tpu.matmul %50, %49, %cst_13 {dimension_numbers = #tpu.dot_dimension_numbers<[1], [0], [0], [1], [0, 0, 1, 1], [], []>} : vector<16x32xbf16>, vector<32x128xbf16>, vector<16x128xf32> -> vector<16x128xf32>
    %52 = vector.broadcast %8 : vector<1x128xf32> to vector<16x128xf32>
    %53 = arith.addf %51, %52 : vector<16x128xf32>
    %54 = vector.extract_strided_slice %53 {offsets = [0, 0], sizes = [16, 32], strides = [1, 1]} : vector<16x128xf32> to vector<16x32xf32>
    %55 = vector.extract_strided_slice %53 {offsets = [0, 32], sizes = [16, 32], strides = [1, 1]} : vector<16x128xf32> to vector<16x32xf32>
    %56 = vector.extract_strided_slice %53 {offsets = [0, 64], sizes = [16, 32], strides = [1, 1]} : vector<16x128xf32> to vector<16x32xf32>
    %57 = tpu.iota {dimensions = array<i32: 0>} : vector<16x16xi32>
    %c3_i32 = arith.constant 3 : i32
    %58 = vector.broadcast %c3_i32 : i32 to vector<16x16xi32>
    %59 = arith.shrsi %57, %58 : vector<16x16xi32>
    %60 = tpu.iota {dimensions = array<i32: 1>} : vector<16x16xi32>
    %c3_i32_14 = arith.constant 3 : i32
    %61 = vector.broadcast %c3_i32_14 : i32 to vector<16x16xi32>
    %62 = arith.shrsi %60, %61 : vector<16x16xi32>
    %63 = arith.cmpi eq, %59, %62 : vector<16x16xi32>
    %c0_15 = arith.constant 0 : index
    %c0_16 = arith.constant 0 : index
    %64 = vector.load %arg1[%c0_15, %c0_16] : memref<1x16xf32, #tpu.memory_space<vmem>>, vector<1x16xf32>
    %cst_17 = arith.constant 5.000000e-01 : f32
    %65 = vector.broadcast %cst_17 : f32 to vector<1x16xf32>
    %66 = arith.cmpf ogt, %64, %65 : vector<1x16xf32>
    %67 = vector.broadcast %66 : vector<1x16xi1> to vector<16x16xi1>
    %68 = arith.andi %63, %67 : vector<16x16xi1>
    %cst_18 = arith.constant 0.000000e+00 : f32
    %cst_19 = arith.constant -1.000000e+09 : f32
    %69 = vector.broadcast %cst_18 : f32 to vector<16x16xf32>
    %70 = vector.broadcast %cst_19 : f32 to vector<16x16xf32>
    %71 = arith.select %68, %69, %70 : vector<16x16xi1>, vector<16x16xf32>
    %72 = arith.truncf %54 : vector<16x32xf32> to vector<16x32xbf16>
    %73 = arith.truncf %55 : vector<16x32xf32> to vector<16x32xbf16>
    %cst_20 = arith.constant dense<0.000000e+00> : vector<16x16xf32>
    %74 = tpu.matmul %72, %73, %cst_20 {dimension_numbers = #tpu.dot_dimension_numbers<[1], [1], [0], [0], [0, 0, 1, 0], [], []>} : vector<16x32xbf16>, vector<16x32xbf16>, vector<16x16xf32> -> vector<16x16xf32>
    %cst_21 = arith.constant 0.176776692 : f32
    %75 = vector.broadcast %cst_21 : f32 to vector<16x16xf32>
    %76 = arith.mulf %74, %75 : vector<16x16xf32>
    %77 = arith.addf %76, %71 : vector<16x16xf32>
    %cst_22 = arith.constant dense<0xFF800000> : vector<16xf32>
    %78 = vector.multi_reduction <maximumf>, %77, %cst_22 [1] : vector<16x16xf32> to vector<16xf32>
    %79 = vector.shape_cast %78 : vector<16xf32> to vector<16x1xf32>
    %80 = vector.broadcast %79 : vector<16x1xf32> to vector<16x16xf32>
    %81 = arith.subf %77, %80 : vector<16x16xf32>
    %82 = math.exp %81 : vector<16x16xf32>
    %cst_23 = arith.constant dense<0.000000e+00> : vector<16xf32>
    %83 = vector.multi_reduction <add>, %82, %cst_23 [1] : vector<16x16xf32> to vector<16xf32>
    %84 = vector.shape_cast %83 : vector<16xf32> to vector<16x1xf32>
    %85 = tpu.reciprocal %84 {approx = true} : vector<16x1xf32> -> vector<16x1xf32>
    %86 = vector.broadcast %85 : vector<16x1xf32> to vector<16x16xf32>
    %87 = arith.mulf %82, %86 : vector<16x16xf32>
    %88 = arith.truncf %87 : vector<16x16xf32> to vector<16x16xbf16>
    %89 = arith.truncf %56 : vector<16x32xf32> to vector<16x32xbf16>
    %cst_24 = arith.constant dense<0.000000e+00> : vector<16x32xf32>
    %90 = tpu.matmul %88, %89, %cst_24 {dimension_numbers = #tpu.dot_dimension_numbers<[1], [0], [0], [1], [0, 0, 1, 1], [], []>} : vector<16x16xbf16>, vector<16x32xbf16>, vector<16x32xf32> -> vector<16x32xf32>
    %91 = arith.truncf %90 : vector<16x32xf32> to vector<16x32xbf16>
    %92 = vector.extract_strided_slice %49 {offsets = [0, 96], sizes = [32, 32], strides = [1, 1]} : vector<32x128xbf16> to vector<32x32xbf16>
    %cst_25 = arith.constant dense<0.000000e+00> : vector<16x32xf32>
    %93 = tpu.matmul %91, %92, %cst_25 {dimension_numbers = #tpu.dot_dimension_numbers<[1], [0], [0], [1], [0, 0, 1, 1], [], []>} : vector<16x32xbf16>, vector<32x32xbf16>, vector<16x32xf32> -> vector<16x32xf32>
    %94 = vector.extract_strided_slice %8 {offsets = [0, 96], sizes = [1, 32], strides = [1, 1]} : vector<1x128xf32> to vector<1x32xf32>
    %95 = vector.broadcast %94 : vector<1x32xf32> to vector<16x32xf32>
    %96 = arith.addf %93, %95 : vector<16x32xf32>
    %97 = arith.addf %48, %96 : vector<16x32xf32>
    %cst_26 = arith.constant dense<0.000000e+00> : vector<16xf32>
    %98 = vector.multi_reduction <add>, %97, %cst_26 [1] : vector<16x32xf32> to vector<16xf32>
    %99 = vector.shape_cast %98 : vector<16xf32> to vector<16x1xf32>
    %cst_27 = arith.constant 3.200000e+01 : f32
    %100 = vector.broadcast %cst_27 : f32 to vector<16x1xf32>
    %101 = arith.divf %99, %100 : vector<16x1xf32>
    %102 = vector.broadcast %101 : vector<16x1xf32> to vector<16x32xf32>
    %103 = arith.subf %97, %102 : vector<16x32xf32>
    %104 = arith.mulf %103, %103 : vector<16x32xf32>
    %cst_28 = arith.constant dense<0.000000e+00> : vector<16xf32>
    %105 = vector.multi_reduction <add>, %104, %cst_28 [1] : vector<16x32xf32> to vector<16xf32>
    %106 = vector.shape_cast %105 : vector<16xf32> to vector<16x1xf32>
    %cst_29 = arith.constant 3.200000e+01 : f32
    %107 = vector.broadcast %cst_29 : f32 to vector<16x1xf32>
    %108 = arith.divf %106, %107 : vector<16x1xf32>
    %109 = vector.broadcast %101 : vector<16x1xf32> to vector<16x32xf32>
    %110 = arith.subf %97, %109 : vector<16x32xf32>
    %cst_30 = arith.constant 9.99999996E-13 : f32
    %111 = vector.broadcast %cst_30 : f32 to vector<16x1xf32>
    %112 = arith.addf %108, %111 : vector<16x1xf32>
    %113 = math.rsqrt %112 : vector<16x1xf32>
    %114 = vector.broadcast %113 : vector<16x1xf32> to vector<16x32xf32>
    %115 = arith.mulf %110, %114 : vector<16x32xf32>
    %116 = vector.broadcast %4 : vector<1x32xf32> to vector<16x32xf32>
    %117 = arith.mulf %115, %116 : vector<16x32xf32>
    %118 = vector.broadcast %5 : vector<1x32xf32> to vector<16x32xf32>
    %119 = arith.addf %117, %118 : vector<16x32xf32>
    %120 = arith.truncf %119 : vector<16x32xf32> to vector<16x32xbf16>
    %c160 = arith.constant 160 : index
    %c0_31 = arith.constant 0 : index
    %121 = vector.load %arg3[%c160, %c0_31] : memref<384x128xbf16, #tpu.memory_space<vmem>>, vector<32x128xbf16>
    %cst_32 = arith.constant dense<0.000000e+00> : vector<16x128xf32>
    %122 = tpu.matmul %120, %121, %cst_32 {dimension_numbers = #tpu.dot_dimension_numbers<[1], [0], [0], [1], [0, 0, 1, 1], [], []>} : vector<16x32xbf16>, vector<32x128xbf16>, vector<16x128xf32> -> vector<16x128xf32>
    %123 = vector.extract_strided_slice %122 {offsets = [0, 0], sizes = [16, 64], strides = [1, 1]} : vector<16x128xf32> to vector<16x64xf32>
    %124 = vector.broadcast %9 : vector<1x64xf32> to vector<16x64xf32>
    %125 = arith.addf %123, %124 : vector<16x64xf32>
    %126 = arith.mulf %125, %125 : vector<16x64xf32>
    %127 = arith.mulf %125, %126 : vector<16x64xf32>
    %cst_33 = arith.constant 4.471500e-02 : f32
    %128 = vector.broadcast %cst_33 : f32 to vector<16x64xf32>
    %129 = arith.mulf %128, %127 : vector<16x64xf32>
    %130 = arith.addf %125, %129 : vector<16x64xf32>
    %cst_34 = arith.constant 0.797884583 : f32
    %131 = vector.broadcast %cst_34 : f32 to vector<16x64xf32>
    %132 = arith.mulf %131, %130 : vector<16x64xf32>
    %133 = math.tanh %132 : vector<16x64xf32>
    %cst_35 = arith.constant 1.000000e+00 : f32
    %134 = vector.broadcast %cst_35 : f32 to vector<16x64xf32>
    %135 = arith.addf %134, %133 : vector<16x64xf32>
    %cst_36 = arith.constant 5.000000e-01 : f32
    %136 = vector.broadcast %cst_36 : f32 to vector<16x64xf32>
    %137 = arith.mulf %136, %135 : vector<16x64xf32>
    %138 = arith.mulf %125, %137 : vector<16x64xf32>
    %139 = arith.truncf %138 : vector<16x64xf32> to vector<16x64xbf16>
    %c192 = arith.constant 192 : index
    %c0_37 = arith.constant 0 : index
    %140 = vector.load %arg3[%c192, %c0_37] : memref<384x128xbf16, #tpu.memory_space<vmem>>, vector<64x128xbf16>
    %cst_38 = arith.constant dense<0.000000e+00> : vector<16x128xf32>
    %141 = tpu.matmul %139, %140, %cst_38 {dimension_numbers = #tpu.dot_dimension_numbers<[1], [0], [0], [1], [0, 0, 1, 1], [], []>} : vector<16x64xbf16>, vector<64x128xbf16>, vector<16x128xf32> -> vector<16x128xf32>
    %142 = vector.extract_strided_slice %141 {offsets = [0, 0], sizes = [16, 32], strides = [1, 1]} : vector<16x128xf32> to vector<16x32xf32>
    %143 = vector.broadcast %10 : vector<1x32xf32> to vector<16x32xf32>
    %144 = arith.addf %142, %143 : vector<16x32xf32>
    %145 = arith.addf %119, %144 : vector<16x32xf32>
    %cst_39 = arith.constant dense<0.000000e+00> : vector<16xf32>
    %146 = vector.multi_reduction <add>, %145, %cst_39 [1] : vector<16x32xf32> to vector<16xf32>
    %147 = vector.shape_cast %146 : vector<16xf32> to vector<16x1xf32>
    %cst_40 = arith.constant 3.200000e+01 : f32
    %148 = vector.broadcast %cst_40 : f32 to vector<16x1xf32>
    %149 = arith.divf %147, %148 : vector<16x1xf32>
    %150 = vector.broadcast %149 : vector<16x1xf32> to vector<16x32xf32>
    %151 = arith.subf %145, %150 : vector<16x32xf32>
    %152 = arith.mulf %151, %151 : vector<16x32xf32>
    %cst_41 = arith.constant dense<0.000000e+00> : vector<16xf32>
    %153 = vector.multi_reduction <add>, %152, %cst_41 [1] : vector<16x32xf32> to vector<16xf32>
    %154 = vector.shape_cast %153 : vector<16xf32> to vector<16x1xf32>
    %cst_42 = arith.constant 3.200000e+01 : f32
    %155 = vector.broadcast %cst_42 : f32 to vector<16x1xf32>
    %156 = arith.divf %154, %155 : vector<16x1xf32>
    %157 = vector.broadcast %149 : vector<16x1xf32> to vector<16x32xf32>
    %158 = arith.subf %145, %157 : vector<16x32xf32>
    %cst_43 = arith.constant 9.99999996E-13 : f32
    %159 = vector.broadcast %cst_43 : f32 to vector<16x1xf32>
    %160 = arith.addf %156, %159 : vector<16x1xf32>
    %161 = math.rsqrt %160 : vector<16x1xf32>
    %162 = vector.broadcast %161 : vector<16x1xf32> to vector<16x32xf32>
    %163 = arith.mulf %158, %162 : vector<16x32xf32>
    %164 = vector.broadcast %6 : vector<1x32xf32> to vector<16x32xf32>
    %165 = arith.mulf %163, %164 : vector<16x32xf32>
    %166 = vector.broadcast %7 : vector<1x32xf32> to vector<16x32xf32>
    %167 = arith.addf %165, %166 : vector<16x32xf32>
    %168 = tpu.iota {dimensions = array<i32: 0>} : vector<2x16xi32>
    %169 = tpu.iota {dimensions = array<i32: 1>} : vector<2x16xi32>
    %c3_i32_44 = arith.constant 3 : i32
    %170 = vector.broadcast %c3_i32_44 : i32 to vector<2x16xi32>
    %171 = arith.shrsi %169, %170 : vector<2x16xi32>
    %172 = arith.cmpi eq, %168, %171 : vector<2x16xi32>
    %cst_45 = arith.constant 1.250000e-01 : f32
    %cst_46 = arith.constant 0.000000e+00 : f32
    %173 = vector.broadcast %cst_45 : f32 to vector<2x16xf32>
    %174 = vector.broadcast %cst_46 : f32 to vector<2x16xf32>
    %175 = arith.select %172, %173, %174 : vector<2x16xi1>, vector<2x16xf32>
    %cst_47 = arith.constant dense<0.000000e+00> : vector<2x32xf32>
    %176 = tpu.matmul %175, %167, %cst_47 {dimension_numbers = #tpu.dot_dimension_numbers<[1], [0], [0], [1], [0, 0, 1, 1], [], []>} : vector<2x16xf32>, vector<16x32xf32>, vector<2x32xf32> -> vector<2x32xf32>
    %c0_48 = arith.constant 0 : index
    %c0_49 = arith.constant 0 : index
    %177 = vector.load %arg2[%c0_48, %c0_49] : memref<2x8xf32, #tpu.memory_space<vmem>>, vector<2x8xf32>
    %cst_50 = arith.constant dense<0.000000e+00> : vector<2x64xf32>
    %178 = tpu.matmul %177, %14, %cst_50 {dimension_numbers = #tpu.dot_dimension_numbers<[1], [0], [0], [1], [0, 0, 1, 1], [], []>} : vector<2x8xf32>, vector<8x64xf32>, vector<2x64xf32> -> vector<2x64xf32>
    %179 = vector.broadcast %11 : vector<1x64xf32> to vector<2x64xf32>
    %180 = arith.addf %178, %179 : vector<2x64xf32>
    %cst_51 = arith.constant 0.000000e+00 : f32
    %181 = vector.broadcast %cst_51 : f32 to vector<2x64xf32>
    %182 = arith.maximumf %180, %181 : vector<2x64xf32>
    %183 = arith.truncf %182 : vector<2x64xf32> to vector<2x64xbf16>
    %c256 = arith.constant 256 : index
    %c0_52 = arith.constant 0 : index
    %184 = vector.load %arg3[%c256, %c0_52] : memref<384x128xbf16, #tpu.memory_space<vmem>>, vector<64x128xbf16>
    %cst_53 = arith.constant dense<0.000000e+00> : vector<2x128xf32>
    %185 = tpu.matmul %183, %184, %cst_53 {dimension_numbers = #tpu.dot_dimension_numbers<[1], [0], [0], [1], [0, 0, 1, 1], [], []>} : vector<2x64xbf16>, vector<64x128xbf16>, vector<2x128xf32> -> vector<2x128xf32>
    %186 = vector.extract_strided_slice %185 {offsets = [0, 0], sizes = [2, 32], strides = [1, 1]} : vector<2x128xf32> to vector<2x32xf32>
    %187 = vector.broadcast %12 : vector<1x32xf32> to vector<2x32xf32>
    %188 = arith.addf %186, %187 : vector<2x32xf32>
    %cst_54 = arith.constant 0.000000e+00 : f32
    %189 = vector.broadcast %cst_54 : f32 to vector<2x32xf32>
    %190 = arith.maximumf %188, %189 : vector<2x32xf32>
    %c320 = arith.constant 320 : index
    %c0_55 = arith.constant 0 : index
    %191 = vector.load %arg3[%c320, %c0_55] : memref<384x128xbf16, #tpu.memory_space<vmem>>, vector<64x128xbf16>
    %192 = arith.truncf %176 : vector<2x32xf32> to vector<2x32xbf16>
    %193 = vector.extract_strided_slice %191 {offsets = [0, 0], sizes = [32, 128], strides = [1, 1]} : vector<64x128xbf16> to vector<32x128xbf16>
    %cst_56 = arith.constant dense<0.000000e+00> : vector<2x128xf32>
    %194 = tpu.matmul %192, %193, %cst_56 {dimension_numbers = #tpu.dot_dimension_numbers<[1], [0], [0], [1], [0, 0, 1, 1], [], []>} : vector<2x32xbf16>, vector<32x128xbf16>, vector<2x128xf32> -> vector<2x128xf32>
    %195 = arith.truncf %190 : vector<2x32xf32> to vector<2x32xbf16>
    %196 = vector.extract_strided_slice %191 {offsets = [32, 0], sizes = [32, 128], strides = [1, 1]} : vector<64x128xbf16> to vector<32x128xbf16>
    %cst_57 = arith.constant dense<0.000000e+00> : vector<2x128xf32>
    %197 = tpu.matmul %195, %196, %cst_57 {dimension_numbers = #tpu.dot_dimension_numbers<[1], [0], [0], [1], [0, 0, 1, 1], [], []>} : vector<2x32xbf16>, vector<32x128xbf16>, vector<2x128xf32> -> vector<2x128xf32>
    %198 = arith.addf %194, %197 : vector<2x128xf32>
    %199 = vector.broadcast %13 : vector<1x128xf32> to vector<2x128xf32>
    %200 = arith.addf %198, %199 : vector<2x128xf32>
    %c0_58 = arith.constant 0 : index
    %c0_59 = arith.constant 0 : index
    %201 = vector.load %arg5[%c0_58, %c0_59] : memref<2x128xf32, #tpu.memory_space<vmem>>, vector<2x128xf32>
    tpu.vector_store %arg5[%c0_58, %c0_59], %200 {strides = array<i32>} : memref<2x128xf32, #tpu.memory_space<vmem>>, vector<2x128xf32>,
    return
  }
}

</mosaic_0001>

<bundles_post_ra>
// kernel: pullup_forward.1
= control target key start
LH: loop header
LB: loop body
LE: loop exit
PB: predicated region body
PF: predicated region fallthrough
CT: control target
= control target key end

     0   :  { %10 = vsyncpa [#allocation3], 0  ;;  %s1653_s0 = inlined_call_operand.vmem [shape: s32[16,1], index: 0, kind: input, shape index: {}]   ;;  %s1654_s1 = inlined_call_operand.vmem [shape: f32[1,16], index: 1, kind: input, shape index: {}]   ;;  %s1655_s2 = inlined_call_operand.vmem [shape: f32[2,8], index: 2, kind: input, shape index: {}]   ;;  %s1656_s3 = inlined_call_operand.hbm [shape: bf16[384,128], index: 3, kind: input, shape index: {}]   ;;  %s1657_s4 = inlined_call_operand.hbm [shape: f32[40,128], index: 4, kind: input, shape index: {}]   ;;  %s1658_s5 = inlined_call_operand.hbm [shape: f32[2,128], index: 5, kind: output, shape index: {}]  }
   0x1   :  { %11 = vsyncpa [#allocation6], 0 }
   0x2   :  { %12 = vsyncpa [#allocation4], 0  ;;  %s1428_s18 = smov [#allocation2]  }
   0x3   :  { %s24_s19 = sshll.u32 %s1428_s18, 4  ;;  %s25_s19 = int_to_ptr.vmem [resolvable:$true] %s24_s19 }
   0x4   :  { %s1370_s20 = scalar_lea.vmem %s25_s19, 3072  ;;  %p1375_p1 = scmp.lt.s32.totalorder %s25_s19, %s25_s19 }
   0x5   :  { %p1371_p0 = scmp.ne.s32.totalorder %s25_s19, %s1370_s20  ;;  %p1376_p2 = scmp.lt.s32.totalorder %s1370_s20, %s1370_s20 }
   0x7   :  { %p1377_p3 = por %p1376_p2, %p1375_p1 }
   0x9   :  { %p1378_p4 = pnand %p1377_p3, %p1371_p0 }
   0xb   :  { %1381 = shalt.err (!%p1378_p4)
}
   0xc   :  { %s1429_s21 = smov 64   ;;  %s1430_s22 = smov 4  }
   0xd   :  { %30 = dma.hbm_to_vmem [thread:$0]  %s1656_s3, 3072, %s25_s19, [#allocation3], %s1429_s21, %s1429_s21, %s1430_s22  }
   0xe   :  { %s1431_s25 = smov [#allocation5]  }
   0xf   :  { %s36_s26 = sshll.u32 %s1431_s25, 4  ;;  %s37_s26 = int_to_ptr.vmem [resolvable:$true] %s36_s26 }
  0x10   :  { %s1390_s27 = scalar_lea.vmem %s37_s26, 640  ;;  %p1395_p6 = scmp.lt.s32.totalorder %s37_s26, %s37_s26 }
  0x11   :  { %p1391_p5 = scmp.ne.s32.totalorder %s37_s26, %s1390_s27  ;;  %p1396_p7 = scmp.lt.s32.totalorder %s1390_s27, %s1390_s27 }
  0x13   :  { %p1397_p8 = por %p1396_p7, %p1395_p6 }
  0x15   :  { %p1398_p9 = pnand %p1397_p8, %p1391_p5 }
  0x17   :  { %1401 = shalt.err (!%p1398_p9)
}
  0x18   :  { %s1432_s28 = smov 128   ;;  %s1433_s29 = smov 8  }
  0x19   :  { %42 = dma.hbm_to_vmem [thread:$0]  %s1657_s4, 640, %s37_s26, [#allocation6], %s1432_s28, %s1432_s28, %s1433_s29  }
  0x1a   :  { %1422 = dma.done.wait [#allocation3], 3072  }
  0x1b   :  { %1423 = vsyncadd [#allocation3], 4294964224 }
  0x1c   :  { %1424 = dma.done.wait [#allocation6], 640  }
  0x1d   :  { %1425 = vsyncadd [#allocation6], 4294966656  ;;  %v1434_v0 = vmov 0   ;;  %v1435_v1 = vmov 0.0   ;;  %v55_v2 = vld [vmem:[%s1653_s0] sm:$0xff]  ;;  %v56_v3 = vld [vmem:[%s1653_s0 + $0x8] sm:$0xff]  ;;  %v57_v12 = vlaneseq }
  0x1e   :  { %1313 = vset.pattern.permute.xlu0 %v1434_v0  ;;  %1191 = vmatprep.subr.bf16.mxu0 %v1435_v1  ;;  %v1314_v4 = vld [vmem:[#allocation2 + $0x38] sm:$0xff]   ;;  %v1315_v5 = vld [vmem:[#allocation2 + $0x30] sm:$0xff]   ;;  %vm1436_vm0 = vmmov 0   ;;  %v1316_v6 = vld [vmem:[#allocation2 + $0x28] sm:$0xff]   ;;  %v1437_v16 = vmov 1.0|1.0  }
  0x1f   :  { %1211 = vmatprep.subr.bf16.mxu1 %v1435_v1  ;;  %60 = vperm.xlu0 %1313, %v55_v2   ;;  %v1317_v7 = vld [vmem:[#allocation2 + $0x20] sm:$0xff]   ;;  %v1318_v8 = vld [vmem:[#allocation2 + $0x18] sm:$0xff]   ;;  %v1319_v9 = vld [vmem:[#allocation2 + $0x10] sm:$0xff]   ;;  %v1501_v14 = vand.u32 127, %v57_v12  ;;  %vm177_vm4 = vcmask 261120   ;;  %v1519_v45 = vshrl.u32 %v57_v12, 7 }
  0x20   :  { %1192 = vmatpush3.bf16.msra.mxu0 %v1314_v4  ;;  %1207 = vmatprep.mubr.msk.bf16.mxu0 %vm1436_vm0, %v1435_v1  ;;  %v1320_v10 = vld [vmem:[#allocation2 + $0x8] sm:$0xff]   ;;  %v1321_v11 = vld [vmem:[#allocation2] sm:$0xff]   ;;  %v1524_v47 = vld [vmem:[#allocation5 + $0x10] sm:$0xff]  ;;  %s1438_s0 = smov 96   ;;  %vm357_vm11 = vcmask 130048   ;;  %vm641_vm12 = vcmask 523264  }
  0x21   :  { %1193 = vmatprep.subr.bf16.mxu0 %v1435_v1  ;;  %1215 = vmatprep.mubr.msk.bf16.mxu1 %vm1436_vm0, %v1435_v1  ;;  %v50_v17 = vld [vmem:[#allocation5] sm:$0xff]  ;;  %v51_v21 = vld [vmem:[#allocation5 + $0x8] sm:$0xff]  ;;  %v1522_v46 = vsub.s32 0, %v1519_v45  ;;  %v213_v51 = vsub.s32 1, %v1519_v45  ;;  %v224_v60 = vsub.s32 6, %v1519_v45  ;;  %v285_v12 = vshra.s32 %v1519_v45, 3 }
  0x22   :  { %v1511_v37 = vld [vmem:[#allocation2 + $0x48] sm:$0xff]   ;;  %v1514_v38 = vld [vmem:[#allocation2 + $0x40] sm:$0xff]   ;;  %vm812_vm14 = vcmask 64512  }
  0x23   :  { %63 = vperm.xlu0 %1313, %v56_v3   ;;  %1212 = vmatpush3.bf16.msra.mxu1 %v1511_v37  ;;  %v208_v49 = vrot.slane %v1524_v47, %v1522_v46  ;;  %v214_v55 = vrot.slane %v1524_v47, %v213_v51  ;;  %v225_v62 = vrot.slane %v1524_v47, %v224_v60 }
  0x24   :  { %1194 = vmatpush3.bf16.msra.mxu0 %v1315_v5  ;;  %1213 = vmatprep.subr.bf16.mxu1 %v1435_v1 }
  0x25   :  { %1195 = vmatprep.subr.bf16.mxu0 %v1435_v1 }
  0x27   :  { %1214 = vmatpush3.bf16.msra.mxu1 %v1514_v38 }
  0x28   :  { %1196 = vmatpush3.bf16.msra.mxu0 %v1316_v6  ;;  %1219 = vmatprep.subr.bf16.mxu1 %v1435_v1 }
  0x29   :  { %1197 = vmatprep.subr.bf16.mxu0 %v1435_v1 }
  0x2c   :  { %1198 = vmatpush3.bf16.msra.mxu0 %v1317_v7 }
  0x2d   :  { %1199 = vmatprep.subr.bf16.mxu0 %v1435_v1 }
  0x30   :  { %1200 = vmatpush3.bf16.msra.mxu0 %v1318_v8 }
  0x31   :  { %1201 = vmatprep.subr.bf16.mxu0 %v1435_v1 }
  0x34   :  { %1202 = vmatpush3.bf16.msra.mxu0 %v1319_v9  ;;  %v290_v9 = vld [vmem:[%s1654_s1] sm:$0x1]  ;;  %s1440_s1 = smov 32  }
  0x35   :  { %1203 = vmatprep.subr.bf16.mxu0 %v1435_v1  ;;  %vm291_vm5 = vcmp.gt.f32.partialorder %v290_v9, 0.5 }
  0x38   :  { %1204 = vmatpush3.bf16.msra.mxu0 %v1320_v10  ;;  %v292_v10 = vsel %vm291_vm5, 1, %v1434_v0 }
  0x39   :  { %1205 = vmatprep.subr.bf16.mxu0 %v1435_v1 }
  0x3c   :  { %1206 = vmatpush3.bf16.msra.mxu0 %v1321_v11  ;;  %v284_v11 = vadd.s32 8, %v1519_v45 }
  0x3d   :  { %1239 = vmatprep.subr.bf16.mxu0 %v1435_v1 }
  0x9a   :  { %v61_v13 = vpop.permute.xlu0 %60 }
  0x9b   :  { %vm65_vm1 = vcmp.eq.s32.totalorder %v1501_v14, %v61_v13  ;;  %v1555_v13 = vshra.s32 %v1501_v14, 3 }
  0x9d   :  { %vm288_vm6 = vcmp.eq.s32.totalorder %v285_v12, %v1555_v13  ;;  %vm732_vm13 = vcmp.eq.s32.totalorder %v1519_v45, %v1555_v13 }
  0x9e   :  { %v64_v15 = vpop.permute.xlu0 %63 }
  0x9f   :  { %vm66_vm2 = vcmp.eq.s32.totalorder %v1501_v14, %v64_v15  ;;  %v296_v15 = vrot.slane %v292_v10, %v1522_v46 }
  0xa0   :  { %vm1119_vm3 = vmpackc.low %vm66_vm2, %vm65_vm1 }
  0xa1   :  { %1208 = vmatmul.mubr.msk.bf16.vlgmr.msra.gmra.mxu0 %vm1119_vm3, %v1437_v16  ;;  %v286_v16 = vshra.s32 %v284_v11, 3  ;;  %vm297_vm7 = vcmp.eq.s32.totalorder %v296_v15, 1 }
  0xa2   :  { %1243 = vmatprep.mubr.msk.bf16.mxu0 %vm1436_vm0, %v1435_v1  ;;  %vm298_vm8 = vmand %vm288_vm6, %vm297_vm7 }
  0xa3   :  { %vm289_vm9 = vcmp.eq.s32.totalorder %v286_v16, %v1555_v13  ;;  %v1331_v13 = vld [vmem:[#allocation2 + $0x90] sm:$0xff]  }
  0xa4   :  { %vm299_vm10 = vmand %vm289_vm9, %vm297_vm7 }
 0x161   :  { %v168_v18 = vpop.f32.mrf.mxu0 }
 0x162   :  { %v175_v19 = vadd.f32 %v168_v18, %v50_v17  ;;  %v1439_v18 = vmov -1e+09  }
 0x163   :  { %v1209_v20 = vpop.f32.mrf.mxu0  ;;  %v301_v14 = vsel %vm299_vm10, 0.0, %v1439_v18 }
 0x164   :  { %v178_v22 = vsel %vm177_vm4, %v175_v19, 0.0 }
 0x165   :  { %v171_v23 = vpop.f32.mrf.mxu0  ;;  %179 = vadd.xlane.f32.xlu1 %v178_v22 }
 0x166   :  { %v176_v24 = vadd.f32 %v171_v23, %v51_v21 }
 0x167   :  { %v1210_v25 = vpop.f32.mrf.mxu0 }
 0x168   :  { %v181_v26 = vsel %vm177_vm4, %v176_v24, 0.0 }
 0x169   :  { %182 = vadd.xlane.f32.xlu1 %v181_v26 }
 0x1ee   :  { %v180_v27 = vpop.xlane.xlu1 %179 }
 0x1ef   :  { %v185_v28 = vmul.f32 0.03125, %v180_v27 }
 0x1f1   :  { %v187_v29 = vsub.f32 %v175_v19, %v185_v28  ;;  %v300_v19 = vsel %vm298_vm8, 0.0, %v1439_v18 }
 0x1f2   :  { %v183_v30 = vpop.xlane.xlu1 %182 }
 0x1f3   :  { %v186_v31 = vmul.f32 0.03125, %v183_v30  ;;  %v189_v32 = vmul.f32 %v187_v29, %v187_v29 }
 0x1f5   :  { %v188_v33 = vsub.f32 %v176_v24, %v186_v31  ;;  %v191_v34 = vsel %vm177_vm4, %v189_v32, 0.0 }
 0x1f6   :  { %192 = vadd.xlane.f32.xlu0 %v191_v34 }
 0x1f7   :  { %v190_v35 = vmul.f32 %v188_v33, %v188_v33 }
 0x1f9   :  { %v194_v36 = vsel %vm177_vm4, %v190_v35, 0.0 }
 0x1fa   :  { %195 = vadd.xlane.f32.xlu1 %v194_v36 }
 0x27f   :  { %v193_v39 = vpop.xlane.xlu0 %192 }
 0x280   :  { %v197_v40 = vmul.f32 0.03125, %v193_v39 }
 0x282   :  { %v199_v41 = vadd.f32 1e-12, %v197_v40 }
 0x283   :  { %v196_v42 = vpop.xlane.xlu1 %195 }
 0x284   :  { %1338 = vrsqrt.f32 %v199_v41  ;;  %v198_v43 = vmul.f32 0.03125, %v196_v42 }
 0x286   :  { %v200_v44 = vadd.f32 1e-12, %v198_v43 }
 0x288   :  { %1340 = vrsqrt.f32 %v200_v44 }
 0x291   :  { %v1339_v48 = vpop.eup %1338 }
 0x292   :  { %v203_v50 = vmul.f32 %v1339_v48, %v187_v29 }
 0x294   :  { %v209_v54 = vmul.f32 %v208_v49, %v203_v50 }
 0x295   :  { %v1341_v52 = vpop.eup %1340 }
 0x296   :  { %v204_v53 = vmul.f32 %v1341_v52, %v188_v33  ;;  %v1532_v57 = vadd.f32 %v214_v55, %v209_v54 }
 0x298   :  { %v210_v56 = vmul.f32 %v208_v49, %v204_v53 }
 0x29a   :  { %v1534_v58 = vadd.f32 %v214_v55, %v210_v56 }
 0x29c   :  { %v221_v59 = vpack.c.bf16 %v1534_v58, %v1532_v57 }
 0x29e   :  { %1216 = vmatmul.mubr.msk.bf16.vlgmr.msra.gmra.mxu1 %vm177_vm4, %v221_v59 }
 0x29f   :  { %1221 = vmatprep.mubr.msk.bf16.mxu1 %vm1436_vm0, %v1435_v1 }
 0x35e   :  { %v275_v61 = vpop.f32.mrf.mxu1 }
 0x35f   :  { %v276_v3 = vadd.f32 %v275_v61, %v225_v62 }
 0x360   :  { %v1217_v63 = vpop.f32.mrf.mxu1 }
 0x362   :  { %v278_v2 = vpop.f32.mrf.mxu1 }
 0x363   :  { %v279_v4 = vadd.f32 %v278_v2, %v225_v62 }
 0x364   :  { %v1218_v5 = vpop.f32.mrf.mxu1 }
 0x365   :  { %v302_v6 = vpack.c.bf16 %v279_v4, %v276_v3 }
 0x367   :  { %304 = vrot.lane.b32.xlu1 %v302_v6, %s1438_s0 }
 0x3d9   :  { %v305_v7 = vpop.permute.xlu1 %304 }
 0x3da   :  { %v310_v8 = vsel %vm177_vm4, %v305_v7, 0 }
 0x3db   :  { %1220 = vmatpush3.bf16.xpose.msra.mxu1 %v310_v8 }
 0x3dc   :  { %1225 = vmatprep.subr.bf16.mxu1 %v1435_v1 }
 0x3e2   :  { %1222 = vmatmul.mubr.msk.bf16.vlgmr.msra.gmra.mxu1 %vm177_vm4, %v302_v6 }
 0x3e3   :  { %1227 = vmatprep.mubr.msk.bf16.mxu1 %vm1436_vm0, %v1435_v1 }
 0x4a2   :  { %v346_v17 = vpop.f32.mrf.mxu1 }
 0x4a3   :  { %v353_v0 = vmul.f32 0.17677669, %v346_v17 }
 0x4a4   :  { %v1223_v20 = vpop.f32.mrf.mxu1 }
 0x4a5   :  { %v355_v21 = vadd.f32 %v353_v0, %v300_v19  ;;  %v1324_v19 = vld [vmem:[#allocation2 + $0x58] sm:$0xff]  }
 0x4a6   :  { %v349_v22 = vpop.f32.mrf.mxu1  ;;  %1240 = vmatpush3.bf16.msra.mxu0 %v1324_v19 }
 0x4a7   :  { %v354_v23 = vmul.f32 0.17677669, %v349_v22  ;;  %v358_v24 = vsel %vm357_vm11, %v355_v21, -inf  ;;  %1241 = vmatprep.subr.bf16.mxu0 %v1435_v1 }
 0x4a8   :  { %359 = vmax.xlane.f32.xlu1 %v358_v24  ;;  %v1224_v25 = vpop.f32.mrf.mxu1  ;;  %v513_v24 = vsub.s32 2, %v1519_v45 }
 0x4a9   :  { %v356_v26 = vadd.f32 %v354_v23, %v301_v14 }
 0x4ab   :  { %v361_v27 = vsel %vm357_vm11, %v356_v26, -inf }
 0x4ac   :  { %362 = vmax.xlane.f32.xlu0 %v361_v27  ;;  %v514_v27 = vrot.slane %v1524_v47, %v513_v24 }
 0x4b9   :  { %431 = vrot.lane.b32.xlu1 %v1511_v37, %s1440_s1 }
 0x531   :  { %v360_v28 = vpop.xlane.xlu1 %359 }
 0x532   :  { %v364_v29 = vsub.f32 %v355_v21, %v360_v28  ;;  %v519_v28 = vsub.s32 3, %v1519_v45 }
 0x534   :  { %v366_v30 = vmul.f32 1.442695, %v364_v29 }
 0x535   :  { %v363_v31 = vpop.xlane.xlu0 %362  ;;  %v432_v52 = vpop.permute.xlu1 %431 }
 0x536   :  { %1342 = vpow2.f32 %v366_v30  ;;  %v365_v32 = vsub.f32 %v356_v26, %v363_v31 }
 0x538   :  { %v368_v33 = vmul.f32 1.442695, %v365_v32  ;;  %v520_v32 = vrot.slane %v1524_v47, %v519_v28 }
 0x53a   :  { %1344 = vpow2.f32 %v368_v33 }
 0x543   :  { %v1343_v34 = vpop.eup %1342 }
 0x544   :  { %v370_v35 = vsel %vm357_vm11, %v1343_v34, 0.0 }
 0x545   :  { %371 = vadd.xlane.f32.xlu0 %v370_v35 }
 0x547   :  { %v1345_v36 = vpop.eup %1344 }
 0x548   :  { %v373_v39 = vsel %vm357_vm11, %v1345_v36, 0.0 }
 0x549   :  { %374 = vadd.xlane.f32.xlu0 %v373_v39  ;;  %v1326_v39 = vld [vmem:[#allocation2 + $0x78] sm:$0xff]  }
 0x55f   :  { %381 = vrot.lane.b32.xlu0 %v302_v6, %s1429_s21 }
 0x563   :  { %429 = vrot.lane.b32.xlu0 %v1514_v38, %s1440_s1 }
 0x567   :  { %436 = vrot.lane.b32.xlu0 %v225_v62, %s1440_s1 }
 0x5ce   :  { %v372_v40 = vpop.xlane.xlu0 %371 }
 0x5cf   :  { %1346 = vrcp.f32 %v372_v40  ;;  %v1327_v40 = vld [vmem:[#allocation2 + $0x70] sm:$0xff]  }
 0x5d2   :  { %v375_v41 = vpop.xlane.xlu0 %374 }
 0x5d3   :  { %1348 = vrcp.f32 %v375_v41  ;;  %v1328_v41 = vld [vmem:[#allocation2 + $0x68] sm:$0xff]  }
 0x5d6   :  { %v382_v42 = vpop.permute.xlu0 %381 }
 0x5d7   :  { %1226 = vmatpush3.bf16.msra.mxu1 %v382_v42  ;;  %v1329_v42 = vld [vmem:[#allocation2 + $0x60] sm:$0xff]  }
 0x5d8   :  { %1231 = vmatprep.subr.bf16.mxu1 %v1435_v1 }
 0x5da   :  { %v430_v37 = vpop.permute.xlu0 %429 }
 0x5dc   :  { %v1347_v43 = vpop.eup %1346 }
 0x5dd   :  { %v378_v48 = vmul.f32 %v1347_v43, %v1343_v34  ;;  %v586_v43 = vsub.s32 7, %v1519_v45 }
 0x5de   :  { %v437_v59 = vpop.permute.xlu0 %436 }
 0x5e0   :  { %v1349_v44 = vpop.eup %1348 }
 0x5e1   :  { %v379_v49 = vmul.f32 %v1349_v44, %v1345_v36  ;;  %v587_v44 = vrot.slane %v1524_v47, %v586_v43 }
 0x5e3   :  { %v380_v50 = vpack.c.bf16 %v379_v49, %v378_v48 }
 0x5e5   :  { %1228 = vmatmul.mubr.msk.bf16.vlgmr.msra.gmra.mxu1 %vm357_vm11, %v380_v50 }
 0x5e6   :  { %1232 = vmatpush3.bf16.msra.mxu1 %v432_v52  ;;  %1235 = vmatprep.mubr.msk.bf16.mxu1 %vm1436_vm0, %v1435_v1 }
 0x5e7   :  { %1233 = vmatprep.subr.bf16.mxu1 %v1435_v1 }
 0x5ea   :  { %1234 = vmatpush3.bf16.msra.mxu1 %v430_v37 }
 0x5eb   :  { %1247 = vmatprep.subr.bf16.mxu1 %v1435_v1 }
 0x6a5   :  { %v421_v38 = vpop.f32.mrf.mxu1 }
 0x6a7   :  { %v1229_v53 = vpop.f32.mrf.mxu1 }
 0x6a9   :  { %v424_v54 = vpop.f32.mrf.mxu1 }
 0x6aa   :  { %v428_v55 = vpack.c.bf16 %v424_v54, %v421_v38 }
 0x6ab   :  { %v1230_v56 = vpop.f32.mrf.mxu1 }
 0x6ac   :  { %1236 = vmatmul.mubr.msk.bf16.vlgmr.msra.gmra.mxu1 %vm177_vm4, %v428_v55 }
 0x6ad   :  { %1255 = vmatprep.mubr.msk.bf16.mxu1 %vm1436_vm0, %v1435_v1  ;;  %1248 = vmatpush3.bf16.msra.mxu1 %v1326_v39 }
 0x6ae   :  { %1249 = vmatprep.subr.bf16.mxu1 %v1435_v1 }
 0x6b1   :  { %1250 = vmatpush3.bf16.msra.mxu1 %v1327_v40 }
 0x6b2   :  { %1251 = vmatprep.subr.bf16.mxu1 %v1435_v1 }
 0x6b5   :  { %1252 = vmatpush3.bf16.msra.mxu1 %v1328_v41 }
 0x6b6   :  { %1253 = vmatprep.subr.bf16.mxu1 %v1435_v1 }
 0x6b9   :  { %1254 = vmatpush3.bf16.msra.mxu1 %v1329_v42  ;;  %v722_v42 = vsub.s32 4, %v1519_v45 }
 0x6ba   :  { %1271 = vmatprep.subr.bf16.mxu1 %v1435_v1 }
 0x76c   :  { %v476_v60 = vpop.f32.mrf.mxu1 }
 0x76d   :  { %v477_v61 = vadd.f32 %v476_v60, %v437_v59 }
 0x76e   :  { %v1237_v62 = vpop.f32.mrf.mxu1 }
 0x76f   :  { %v483_v63 = vadd.f32 %v477_v61, %v1532_v57 }
 0x770   :  { %v479_v2 = vpop.f32.mrf.mxu1 }
 0x771   :  { %v480_v3 = vadd.f32 %v479_v2, %v437_v59  ;;  %v485_v4 = vsel %vm177_vm4, %v483_v63, 0.0 }
 0x772   :  { %486 = vadd.xlane.f32.xlu0 %v485_v4  ;;  %v1238_v5 = vpop.f32.mrf.mxu1 }
 0x773   :  { %v484_v6 = vadd.f32 %v480_v3, %v1534_v58  ;;  %v1325_v58 = vld [vmem:[#allocation2 + $0x50] sm:$0xff]  }
 0x774   :  { %1242 = vmatpush3.bf16.msra.mxu0 %v1325_v58 }
 0x775   :  { %v488_v7 = vsel %vm177_vm4, %v484_v6, 0.0  ;;  %1259 = vmatprep.subr.mxu0 %v1435_v1 }
 0x776   :  { %489 = vadd.xlane.f32.xlu1 %v488_v7 }
 0x7fb   :  { %v487_v8 = vpop.xlane.xlu0 %486 }
 0x7fc   :  { %v491_v9 = vmul.f32 0.03125, %v487_v8 }
 0x7fe   :  { %v493_v10 = vsub.f32 %v483_v63, %v491_v9 }
 0x7ff   :  { %v490_v11 = vpop.xlane.xlu1 %489 }
 0x800   :  { %v492_v12 = vmul.f32 0.03125, %v490_v11  ;;  %v495_v15 = vmul.f32 %v493_v10, %v493_v10 }
 0x802   :  { %v494_v16 = vsub.f32 %v484_v6, %v492_v12  ;;  %v497_v57 = vsel %vm177_vm4, %v495_v15, 0.0  ;;  %v1604_v12 = vld [vmem:[#allocation5 + $0x18] sm:$0xff] }
 0x803   :  { %498 = vadd.xlane.f32.xlu0 %v497_v57  ;;  %v689_v15 = vrot.slane %v1604_v12, %v1522_v46 }
 0x804   :  { %v496_v17 = vmul.f32 %v494_v16, %v494_v16 }
 0x806   :  { %v500_v18 = vsel %vm177_vm4, %v496_v17, 0.0 }
 0x807   :  { %501 = vadd.xlane.f32.xlu0 %v500_v18 }
 0x88c   :  { %v499_v0 = vpop.xlane.xlu0 %498 }
 0x88d   :  { %v503_v20 = vmul.f32 0.03125, %v499_v0 }
 0x88f   :  { %v505_v21 = vadd.f32 1e-12, %v503_v20 }
 0x890   :  { %v502_v22 = vpop.xlane.xlu0 %501 }
 0x891   :  { %1350 = vrsqrt.f32 %v505_v21  ;;  %v504_v14 = vmul.f32 0.03125, %v502_v22 }
 0x893   :  { %v506_v23 = vadd.f32 1e-12, %v504_v14 }
 0x895   :  { %1352 = vrsqrt.f32 %v506_v23 }
 0x89e   :  { %v1351_v25 = vpop.eup %1350 }
 0x89f   :  { %v509_v26 = vmul.f32 %v1351_v25, %v493_v10 }
 0x8a1   :  { %v515_v31 = vmul.f32 %v514_v27, %v509_v26 }
 0x8a2   :  { %v1353_v29 = vpop.eup %1352 }
 0x8a3   :  { %v510_v30 = vmul.f32 %v1353_v29, %v494_v16  ;;  %v521_v34 = vadd.f32 %v520_v32, %v515_v31 }
 0x8a5   :  { %v516_v33 = vmul.f32 %v514_v27, %v510_v30 }
 0x8a7   :  { %v522_v35 = vadd.f32 %v520_v32, %v516_v33  ;;  %v1330_v33 = vld [vmem:[#allocation2 + $0x98] sm:$0xff]  }
 0x8a9   :  { %v523_v36 = vpack.c.bf16 %v522_v35, %v521_v34 }
 0x8ab   :  { %1244 = vmatmul.mubr.msk.bf16.vlgmr.msra.gmra.mxu0 %vm177_vm4, %v523_v36 }
 0x8ac   :  { %1263 = vmatprep.mubr.msk.f32.mxu0 %vm1436_vm0, %v1435_v1 }
 0x96b   :  { %v577_v48 = vpop.f32.mrf.mxu0 }
 0x96c   :  { %v588_v49 = vadd.f32 %v587_v44, %v577_v48  ;;  %v728_v48 = vsub.s32 5, %v1519_v45 }
 0x96d   :  { %v1245_v50 = vpop.f32.mrf.mxu0 }
 0x96e   :  { %v590_v52 = vmul.f32 %v588_v49, %v588_v49 }
 0x96f   :  { %v580_v37 = vpop.f32.mrf.mxu0 }
 0x970   :  { %v592_v38 = vmul.f32 %v590_v52, %v588_v49  ;;  %v589_v53 = vadd.f32 %v587_v44, %v580_v37  ;;  %v723_v44 = vrot.slane %v1524_v47, %v722_v42 }
 0x971   :  { %v1246_v54 = vpop.f32.mrf.mxu0 }
 0x972   :  { %v594_v55 = vmul.f32 0.044715, %v592_v38  ;;  %v591_v56 = vmul.f32 %v589_v53, %v589_v53  ;;  %v729_v38 = vrot.slane %v1524_v47, %v728_v48  ;;  %v807_v47 = vld [vmem:[%s1655_s2] sm:$0x3]  ;;  %s1441_s2 = smov [#allocation7]  }
 0x973   :  { %s1101_s13 = sshll.u32 %s1441_s2, 4  ;;  %s1102_s13 = int_to_ptr.vmem [resolvable:$true] %s1101_s13 }
 0x974   :  { %v596_v59 = vadd.f32 %v594_v55, %v588_v49  ;;  %v593_v60 = vmul.f32 %v591_v56, %v589_v53  ;;  %v733_v56 = vsel %vm732_vm13, 0.125, %v1435_v1  ;;  %s1402_s14 = scalar_lea.vmem %s1102_s13, 32  ;;  %p1407_p11 = scmp.lt.s32.totalorder %s1102_s13, %s1102_s13 }
 0x975   :  { %p1403_p10 = scmp.ne.s32.totalorder %s1102_s13, %s1402_s14  ;;  %p1408_p12 = scmp.lt.s32.totalorder %s1402_s14, %s1402_s14 }
 0x976   :  { %v598_v61 = vmul.f32 0.7978846, %v596_v59  ;;  %v595_v62 = vmul.f32 0.044715, %v593_v60  ;;  %v54_v59 = vld [vmem:[#allocation5 + $0x20] sm:$0xff]  ;;  %v1332_v60 = vld [vmem:[#allocation2 + $0x88] sm:$0xff]  }
 0x977   :  { %p1409_p13 = por %p1408_p12, %p1407_p11 }
 0x978   :  { %1354 = vtanh.f32 %v598_v61  ;;  %v597_v63 = vadd.f32 %v595_v62, %v589_v53  ;;  %v1333_v61 = vld [vmem:[#allocation2 + $0x80] sm:$0xff]  }
 0x979   :  { %p1410_p0 = pnand %p1409_p13, %p1403_p10 }
 0x97a   :  { %v599_v2 = vmul.f32 0.7978846, %v597_v63  ;;  %v811_v63 = vrot.slane %v1604_v12, %v213_v51  ;;  %v966_v51 = vrot.slane %v1604_v12, %v513_v24 }
 0x97c   :  { %1356 = vtanh.f32 %v599_v2 }
 0x985   :  { %v1355_v3 = vpop.eup %1354 }
 0x986   :  { %v602_v4 = vadd.f32 1.0, %v1355_v3 }
 0x988   :  { %v604_v6 = vmul.f32 0.5, %v602_v4 }
 0x989   :  { %v1357_v5 = vpop.eup %1356 }
 0x98a   :  { %v603_v7 = vadd.f32 1.0, %v1357_v5  ;;  %v606_v9 = vmul.f32 %v604_v6, %v588_v49 }
 0x98c   :  { %v605_v8 = vmul.f32 0.5, %v603_v7 }
 0x98e   :  { %v607_v10 = vmul.f32 %v605_v8, %v589_v53  ;;  %v1334_v8 = vld [vmem:[#allocation2 + $0xb8] sm:$0xff]  }
 0x990   :  { %v608_v11 = vpack.c.bf16 %v607_v10, %v606_v9  ;;  %v1335_v9 = vld [vmem:[#allocation2 + $0xb0] sm:$0xff]  }
 0x992   :  { %1256 = vmatmul.mubr.msk.bf16.vlgmr.msra.gmra.mxu1 %vm641_vm12, %v608_v11 }
 0x993   :  { %1279 = vmatprep.mubr.msk.bf16.mxu1 %vm1436_vm0, %v1435_v1  ;;  %1272 = vmatpush3.bf16.msra.mxu1 %v1330_v33 }
 0x994   :  { %1273 = vmatprep.subr.bf16.mxu1 %v1435_v1 }
 0x997   :  { %1274 = vmatpush3.bf16.msra.mxu1 %v1331_v13 }
 0x998   :  { %1275 = vmatprep.subr.bf16.mxu1 %v1435_v1 }
 0x99b   :  { %1276 = vmatpush3.bf16.msra.mxu1 %v1332_v60 }
 0x99c   :  { %1277 = vmatprep.subr.bf16.mxu1 %v1435_v1 }
 0x99f   :  { %1278 = vmatpush3.bf16.msra.mxu1 %v1333_v61 }
 0xa52   :  { %v679_v16 = vpop.f32.mrf.mxu1 }
 0xa53   :  { %v690_v57 = vadd.f32 %v689_v15, %v679_v16 }
 0xa54   :  { %v1257_v17 = vpop.f32.mrf.mxu1 }
 0xa55   :  { %v692_v18 = vadd.f32 %v690_v57, %v521_v34  ;;  %v1336_v17 = vld [vmem:[#allocation2 + $0xa8] sm:$0xff]  }
 0xa56   :  { %v682_v19 = vpop.f32.mrf.mxu1 }
 0xa57   :  { %v691_v58 = vadd.f32 %v689_v15, %v682_v19  ;;  %v694_v0 = vsel %vm177_vm4, %v692_v18, 0.0 }
 0xa58   :  { %695 = vadd.xlane.f32.xlu0 %v694_v0  ;;  %v1258_v20 = vpop.f32.mrf.mxu1 }
 0xa59   :  { %v693_v21 = vadd.f32 %v691_v58, %v522_v35  ;;  %v1337_v58 = vld [vmem:[#allocation2 + $0xa0] sm:$0xff]  }
 0xa5b   :  { %v697_v22 = vsel %vm177_vm4, %v693_v21, 0.0 }
 0xa5c   :  { %698 = vadd.xlane.f32.xlu1 %v697_v22 }
 0xae1   :  { %v696_v14 = vpop.xlane.xlu0 %695 }
 0xae2   :  { %v700_v23 = vmul.f32 0.03125, %v696_v14  ;;  %v1092_v14 = vrot.slane %v1604_v12, %v519_v28 }
 0xae4   :  { %v702_v25 = vsub.f32 %v692_v18, %v700_v23 }
 0xae5   :  { %v699_v26 = vpop.xlane.xlu1 %698 }
 0xae6   :  { %v701_v27 = vmul.f32 0.03125, %v699_v26  ;;  %v704_v46 = vmul.f32 %v702_v25, %v702_v25 }
 0xae8   :  { %v703_v29 = vsub.f32 %v693_v21, %v701_v27  ;;  %v706_v30 = vsel %vm177_vm4, %v704_v46, 0.0 }
 0xae9   :  { %707 = vadd.xlane.f32.xlu0 %v706_v30 }
 0xaea   :  { %v705_v31 = vmul.f32 %v703_v29, %v703_v29 }
 0xaec   :  { %v709_v32 = vsel %vm177_vm4, %v705_v31, 0.0 }
 0xaed   :  { %710 = vadd.xlane.f32.xlu1 %v709_v32 }
 0xb72   :  { %v708_v34 = vpop.xlane.xlu0 %707 }
 0xb73   :  { %v712_v35 = vmul.f32 0.03125, %v708_v34 }
 0xb75   :  { %v714_v36 = vadd.f32 1e-12, %v712_v35 }
 0xb76   :  { %v711_v39 = vpop.xlane.xlu1 %710 }
 0xb77   :  { %1358 = vrsqrt.f32 %v714_v36  ;;  %v713_v40 = vmul.f32 0.03125, %v711_v39 }
 0xb79   :  { %v715_v41 = vadd.f32 1e-12, %v713_v40 }
 0xb7b   :  { %1360 = vrsqrt.f32 %v715_v41 }
 0xb84   :  { %v1359_v43 = vpop.eup %1358 }
 0xb85   :  { %v718_v49 = vmul.f32 %v1359_v43, %v702_v25 }
 0xb87   :  { %v724_v53 = vmul.f32 %v723_v44, %v718_v49 }
 0xb88   :  { %v1361_v50 = vpop.eup %1360 }
 0xb89   :  { %v719_v52 = vmul.f32 %v1361_v50, %v703_v29  ;;  %v730_v55 = vadd.f32 %v729_v38, %v724_v53 }
 0xb8b   :  { %v725_v37 = vmul.f32 %v723_v44, %v719_v52 }
 0xb8d   :  { %v731_v54 = vadd.f32 %v729_v38, %v725_v37 }
 0xb8f   :  { %1260 = vmatpush3.msra.mxu0 %v731_v54 }
 0xb90   :  { %1261 = vmatprep.subr.mxu0 %v1435_v1 }
 0xb91   :  { %1262 = vmatpush3.msra.mxu0 %v730_v55 }
 0xb92   :  { %1264 = vmatmul.mubr.msk.f32.vlgmr.msra.gmra.mxu0 %vm357_vm11, %v733_v56  ;;  %1266 = vmatprep.subr.mxu0 %v1435_v1 }
 0xb93   :  { %1267 = vmatpush3.msra.mxu0 %v54_v59  ;;  %1268 = vmatprep.mubr.msk.f32.mxu0 %vm1436_vm0, %v1435_v1 }
 0xb94   :  { %1283 = vmatprep.subr.bf16.mxu0 %v1435_v1 }
 0xb96   :  { %1269 = vmatmul.mubr.msk.f32.vlgmr.msra.gmra.mxu0 %vm812_vm14, %v807_v47 }
 0xb97   :  { %1287 = vmatprep.mubr.msk.bf16.mxu0 %vm1436_vm0, %v1435_v1  ;;  %1284 = vmatpush3.bf16.msra.mxu0 %v1334_v8 }
 0xb98   :  { %1285 = vmatprep.subr.bf16.mxu0 %v1435_v1 }
 0xb9b   :  { %1286 = vmatpush3.bf16.msra.mxu0 %v1335_v9 }
 0xb9c   :  { %1291 = vmatprep.subr.bf16.mxu0 %v1435_v1 }
 0xc52   :  { %v803_v62 = vpop.f32.mrf.mxu0 }
 0xc53   :  { %v977_v0 = vpack.c.bf16 %v803_v62, %v803_v62 }
 0xc54   :  { %v1265_v2 = vpop.f32.mrf.mxu0 }
 0xc56   :  { %v882_v3 = vpop.f32.mrf.mxu0 }
 0xc57   :  { %v883_v4 = vadd.f32 %v882_v3, %v811_v63 }
 0xc58   :  { %v1270_v5 = vpop.f32.mrf.mxu0 }
 0xc59   :  { %v886_v6 = vmax.f32 %v883_v4, 0.0 }
 0xc5b   :  { %v887_v7 = vpack.c.bf16 %v886_v6, %v886_v6 }
 0xc5d   :  { %1280 = vmatmul.mubr.msk.bf16.vlgmr.msra.gmra.mxu1 %vm641_vm12, %v887_v7 }
 0xd1d   :  { %v957_v10 = vpop.f32.mrf.mxu1 }
 0xd1e   :  { %v967_v11 = vadd.f32 %v966_v51, %v957_v10 }
 0xd1f   :  { %v1281_v15 = vpop.f32.mrf.mxu1 }
 0xd20   :  { %v968_v16 = vmax.f32 %v967_v11, 0.0 }
 0xd21   :  { %v960_v57 = vpop.f32.mrf.mxu1 }
 0xd22   :  { %v978_v18 = vpack.c.bf16 %v968_v16, %v968_v16 }
 0xd23   :  { %v1282_v19 = vpop.f32.mrf.mxu1 }
 0xd24   :  { %1288 = vmatmul.mubr.msk.bf16.vlgmr.msra.gmra.mxu0 %vm177_vm4, %v978_v18 }
 0xd25   :  { %1292 = vmatpush3.bf16.msra.mxu0 %v1336_v17  ;;  %1295 = vmatprep.mubr.msk.bf16.mxu0 %vm1436_vm0, %v1435_v1 }
 0xd26   :  { %1293 = vmatprep.subr.bf16.mxu0 %v1435_v1 }
 0xd29   :  { %1294 = vmatpush3.bf16.msra.mxu0 %v1337_v58 }
 0xd2c   :  { %1296 = vmatmul.mubr.msk.bf16.vlgmr.msra.gmra.mxu0 %vm177_vm4, %v977_v0 }
 0xde4   :  { %v1028_v24 = vpop.f32.mrf.mxu0 }
 0xde6   :  { %v1289_v20 = vpop.f32.mrf.mxu0 }
 0xde8   :  { %v1031_v21 = vpop.f32.mrf.mxu0 }
 0xdea   :  { %v1290_v22 = vpop.f32.mrf.mxu0 }
 0xdec   :  { %v1083_v23 = vpop.f32.mrf.mxu0 }
 0xded   :  { %v1084_v25 = vadd.f32 %v1083_v23, %v1028_v24 }
 0xdee   :  { %v1297_v26 = vpop.f32.mrf.mxu0 }
 0xdef   :  { %v1093_v27 = vadd.f32 %v1092_v14, %v1084_v25 }
 0xdf0   :  { %v1086_v1 = vpop.f32.mrf.mxu0 }
 0xdf1   :  { %1094 = vst [vmem:[#allocation7] sm:$0x3] %v1093_v27 }
 0xdf2   :  { %v1298_v46 = vpop.f32.mrf.mxu0 }
 0xdf3   :  { %1413 = shalt.err (!%p1410_p0)
}
 0xdf4   :  { %1104 = dma.vmem_to_hbm [thread:$0]  %s1102_s13, 32, %s1658_s5, [#allocation4]  }
 0xdf5   :  { %1426 = dma.done.wait [#allocation4], 32  }
 0xdf6   :  { %1427 = vsyncadd [#allocation4], 4294967264 }
 0xdf7   :  { %1108 = vsyncpa [#allocation3], 1 }
 0xdf8   :  { %1109 = vsyncpa [#allocation6], 1 }
 0xdf9   :  { %1110 = vsyncpa [#allocation4], 1 }

</bundles_post_ra>
